<compile_context>
chip_gen: v7x
topology: tpu7x:2x2x1
jax: 0.10.0
libtpu: 0.0.40
codegen_flags: <defaults>
</compile_context>

<pallas_src>
import functools

import jax
import jax.numpy as jnp
from jax import lax
from jax.experimental import pallas as pl
from jax.experimental.pallas import tpu as pltpu

LANE = 128
SUBLANE = 8
MAX_TILE_ROWS = 2048   # (2048,128) f32 = 1 MiB; 2 inputs x 2 pipeline bufs = 4 MiB VMEM.
NUM_CORES = 2          # leading "parallel" grid axis; harmless on 1-TC chips.


def _round_up(x, m):
    return ((x + m - 1) // m) * m


def _bce_terms(p, t):
    """F.binary_cross_entropy(reduction='none') with PyTorch's -100 log clamp,
    plus the strict >0.5 / <0.5 pos/neg masks of the original module."""
    log_p = jnp.maximum(jnp.log(p), -100.0)
    log_1mp = jnp.maximum(jnp.log(1.0 - p), -100.0)
    bce = -(t * (log_p - log_1mp) + log_1mp)   # == -(t*log_p + (1-t)*log_1mp)
    pos = (t > 0.5).astype(jnp.float32)
    neg = (t < 0.5).astype(jnp.float32)
    return pos * bce, neg * bce, pos


def _wbce_kernel(logit_ref, truth_ref,
                 pos_loss_ref, neg_loss_ref, pos_cnt_ref,
                 *, rows: int, tile_rows: int, blocks_per_core: int):
    c = pl.program_id(0)                    # core (parallel) axis
    j = pl.program_id(1)                    # reduction (arbitrary) axis
    b = c * blocks_per_core + j             # global row-block index (unclamped)

    @pl.when(j == 0)
    def _():
        pos_loss_ref[...] = jnp.zeros_like(pos_loss_ref)
        neg_loss_ref[...] = jnp.zeros_like(neg_loss_ref)
        pos_cnt_ref[...] = jnp.zeros_like(pos_cnt_ref)

    # Bandwidth-optimal native-dtype load, upcast in-register.
    p = logit_ref[...].astype(jnp.float32)
    t = truth_ref[...].astype(jnp.float32)
    pos_bce, neg_bce, pos = _bce_terms(p, t)

    def _accumulate(pb, nb, ps):
        # (tile_rows, 128) -> (8, 128): sublane-block reduction, pure vreg adds
        # (no XLU), then a single (8,128) add into the resident output block.
        pos_loss_ref[0] += pb.reshape(-1, SUBLANE, LANE).sum(axis=0)
        neg_loss_ref[0] += nb.reshape(-1, SUBLANE, LANE).sum(axis=0)
        pos_cnt_ref[0] += ps.reshape(-1, SUBLANE, LANE).sum(axis=0)

    is_full = (b + 1) * tile_rows <= rows    # every row of this tile is valid
    has_valid = b * tile_rows < rows         # phantom tiles (past the end) skip

    @pl.when(is_full)
    def _():
        # Steady state: zero masking work.
        _accumulate(pos_bce, neg_bce, pos)

    @pl.when(jnp.logical_and(jnp.logical_not(is_full), has_valid))
    def _():
        # Only the (at most one per core) partial edge tile pays for masking.
        # The kernel input is lane-aligned, so a row-level mask suffices; the
        # where-selects also squash any NaN/Inf from unspecified edge data.
        row_ids = lax.broadcasted_iota(jnp.int32, (tile_rows, LANE), 0)
        valid = (b * tile_rows + row_ids) < rows
        _accumulate(jnp.where(valid, pos_bce, 0.0),
                    jnp.where(valid, neg_bce, 0.0),
                    jnp.where(valid, pos, 0.0))


def weighted_bce(logit_pixel, truth_pixel, weights=(0.2, 0.8)):
    """Pallas equivalent of WeightedBCE.forward (returns a scalar f32 loss)."""
    w0, w1 = float(weights[0]), float(weights[1])
    lf = logit_pixel.reshape(-1)
    tf = truth_pixel.reshape(-1)
    assert lf.shape == tf.shape
    n = lf.shape[0]

    rows = n // LANE
    n_main = rows * LANE
    rem = n - n_main

    pos_loss = jnp.float32(0.0)
    neg_loss = jnp.float32(0.0)
    pos_cnt = jnp.float32(0.0)

    if rows > 0:
        assert rows < 2 ** 30  # keep in-kernel row-index arithmetic in int32

        # Lane-aligned prefix (free reshape when rem == 0, the common case;
        # no full-array pad is ever materialised).
        l2 = lf[:n_main].reshape(rows, LANE)
        t2 = tf[:n_main].reshape(rows, LANE)

        tile_rows = min(MAX_TILE_ROWS, _round_up(rows, SUBLANE))
        num_blocks = pl.cdiv(rows, tile_rows)
        blocks_per_core = pl.cdiv(num_blocks, NUM_CORES)
        last_block = num_blocks - 1

        kernel = functools.partial(
            _wbce_kernel, rows=rows, tile_rows=tile_rows,
            blocks_per_core=blocks_per_core)

        def in_map(c, j):
            # Clamp so phantom blocks (past the end on the last core) re-read
            # the final valid block instead of going out of bounds; the kernel
            # skips their accumulation via `has_valid`.
            return (jnp.minimum(c * blocks_per_core + j, last_block), 0)

        in_spec = pl.BlockSpec((tile_rows, LANE), in_map)
        out_spec = pl.BlockSpec((1, SUBLANE, LANE), lambda c, j: (c, 0, 0))
        part_shape = jax.ShapeDtypeStruct((NUM_CORES, SUBLANE, LANE), jnp.float32)

        bytes_accessed = (n_main * (l2.dtype.itemsize + t2.dtype.itemsize)
                          + 3 * NUM_CORES * SUBLANE * LANE * 4)
        cost = pl.CostEstimate(flops=16 * n_main,
                               transcendentals=2 * n_main,
                               bytes_accessed=bytes_accessed)

        pos_loss_p, neg_loss_p, pos_cnt_p = pl.pallas_call(
            kernel,
            out_shape=(part_shape, part_shape, part_shape),
            grid_spec=pltpu.PrefetchScalarGridSpec(
                num_scalar_prefetch=0,
                grid=(NUM_CORES, blocks_per_core),
                in_specs=[in_spec, in_spec],
                out_specs=(out_spec, out_spec, out_spec),
            ),
            compiler_params=pltpu.CompilerParams(
                dimension_semantics=("parallel", "arbitrary")),
            cost_estimate=cost,
        )(l2, t2)

        pos_loss = jnp.sum(pos_loss_p)
        neg_loss = jnp.sum(neg_loss_p)
        pos_cnt = jnp.sum(pos_cnt_p)

    if rem:
        # < 128-element lane tail: tiny plain-JAX epilogue instead of a
        # full-array pad + extra HBM read/write pass.
        tl = lf[n_main:].astype(jnp.float32)
        tt = tf[n_main:].astype(jnp.float32)
        t_pos_bce, t_neg_bce, t_pos = _bce_terms(tl, tt)
        pos_loss = pos_loss + jnp.sum(t_pos_bce)
        neg_loss = neg_loss + jnp.sum(t_neg_bce)
        pos_cnt = pos_cnt + jnp.sum(t_pos)

    # neg_cnt = n - pos_cnt assumes hard {0, 1} labels (no truth exactly 0.5),
    # which is the standard WeightedBCE contract; this drops the 4th
    # accumulator per the perf review.
    # TODO(synk): keep an explicit neg-count accumulator if soft labels with
    # truth == 0.5 must reproduce PyTorch's strict >/< semantics exactly.
    pos_w = pos_cnt + 1e-12
    neg_w = (jnp.float32(n) - pos_cnt) + 1e-12
    return w0 * pos_loss / pos_w + w1 * neg_loss / neg_w


def _weighted_bce_ref(logit_pixel, truth_pixel, weights=(0.2, 0.8)):
    """Pure-JAX reference mirroring the PyTorch module."""
    logit = logit_pixel.reshape(-1).astype(jnp.float32)
    truth = truth_pixel.reshape(-1).astype(jnp.float32)
    log_p = jnp.maximum(jnp.log(logit), -100.0)
    log_1mp = jnp.maximum(jnp.log(1.0 - logit), -100.0)
    loss = -(truth * log_p + (1.0 - truth) * log_1mp)
    pos = (truth > 0.5).astype(jnp.float32)
    neg = (truth < 0.5).astype(jnp.float32)
    pos_w = pos.sum() + 1e-12
    neg_w = neg.sum() + 1e-12
    return (weights[0] * pos * loss / pos_w + weights[1] * neg * loss / neg_w).sum()


if __name__ == "__main__":
    key = jax.random.PRNGKey(0)
    k1, k2 = jax.random.split(key)

    # logit_pixel are probabilities in (0, 1) (binary_cross_entropy expects
    # probs), truth_pixel are {0, 1} labels.  NCHW-like shape (2, 4, 16, 16).
    shape = (2, 4, 16, 16)
    logit_pixel = jax.random.uniform(k1, shape, jnp.float32, minval=0.01, maxval=0.99)
    truth_pixel = (jax.random.uniform(k2, shape, jnp.float32) > 0.5).astype(jnp.float32)

    loss = weighted_bce(logit_pixel, truth_pixel)
    loss = jax.block_until_ready(loss)

    ref = _weighted_bce_ref(logit_pixel, truth_pixel)
    assert jnp.allclose(loss, ref, rtol=1e-5, atol=1e-5), (loss, ref)

    print("KERNEL_OK")
</pallas_src>

<mosaic_0001>
module attributes {stable_mosaic.version = 11 : i64} {
  func.func @_wbce_kernel(%arg0: i32, %arg1: i32, %arg2: memref<16x128xf32, #tpu.memory_space<vmem>>, %arg3: memref<16x128xf32, #tpu.memory_space<vmem>>, %arg4: memref<1x8x128xf32, #tpu.memory_space<vmem>>, %arg5: memref<1x8x128xf32, #tpu.memory_space<vmem>>, %arg6: memref<1x8x128xf32, #tpu.memory_space<vmem>>) attributes {dimension_semantics = [#tpu.dimension_semantics<parallel>, #tpu.dimension_semantics<arbitrary>], iteration_bounds = array<i64: 2, 1>, scalar_prefetch = 0 : i64, scratch_operands = 0 : i64, tpu.core_type = #tpu.core_type<tc>, window_params = [{transform_indices = @transform_0, window_bounds = array<i64: 16, 128>}, {transform_indices = @transform_1, window_bounds = array<i64: 16, 128>}, {transform_indices = @transform_2, window_bounds = array<i64: 1, 8, 128>}, {transform_indices = @transform_3, window_bounds = array<i64: 1, 8, 128>}, {transform_indices = @transform_4, window_bounds = array<i64: 1, 8, 128>}]} {
    %c1_i32 = arith.constant 1 : i32
    %0 = arith.muli %arg0, %c1_i32 : i32
    %1 = arith.addi %0, %arg1 : i32
    %c0_i32 = arith.constant 0 : i32
    %2 = arith.cmpi eq, %arg1, %c0_i32 : i32
    %3 = arith.extui %2 : i1 to i32
    %c0_i32_0 = arith.constant 0 : i32
    %4 = arith.cmpi ne, %3, %c0_i32_0 : i32
    scf.if %4 {
      %cst_15 = arith.constant 0.000000e+00 : f32
      %41 = vector.broadcast %cst_15 : f32 to vector<1x8x128xf32>
      %c0_16 = arith.constant 0 : index
      %c0_17 = arith.constant 0 : index
      %c0_18 = arith.constant 0 : index
      %42 = vector.load %arg4[%c0_16, %c0_17, %c0_18] : memref<1x8x128xf32, #tpu.memory_space<vmem>>, vector<1x8x128xf32>
      tpu.vector_store %arg4[%c0_16, %c0_17, %c0_18], %41 {strides = array<i32>} : memref<1x8x128xf32, #tpu.memory_space<vmem>>, vector<1x8x128xf32>,
      %cst_19 = arith.constant 0.000000e+00 : f32
      %43 = vector.broadcast %cst_19 : f32 to vector<1x8x128xf32>
      %c0_20 = arith.constant 0 : index
      %c0_21 = arith.constant 0 : index
      %c0_22 = arith.constant 0 : index
      %44 = vector.load %arg5[%c0_20, %c0_21, %c0_22] : memref<1x8x128xf32, #tpu.memory_space<vmem>>, vector<1x8x128xf32>
      tpu.vector_store %arg5[%c0_20, %c0_21, %c0_22], %43 {strides = array<i32>} : memref<1x8x128xf32, #tpu.memory_space<vmem>>, vector<1x8x128xf32>,
      %cst_23 = arith.constant 0.000000e+00 : f32
      %45 = vector.broadcast %cst_23 : f32 to vector<1x8x128xf32>
      %c0_24 = arith.constant 0 : index
      %c0_25 = arith.constant 0 : index
      %c0_26 = arith.constant 0 : index
      %46 = vector.load %arg6[%c0_24, %c0_25, %c0_26] : memref<1x8x128xf32, #tpu.memory_space<vmem>>, vector<1x8x128xf32>
      tpu.vector_store %arg6[%c0_24, %c0_25, %c0_26], %45 {strides = array<i32>} : memref<1x8x128xf32, #tpu.memory_space<vmem>>, vector<1x8x128xf32>,
    } else {
    }
    %c0 = arith.constant 0 : index
    %c0_1 = arith.constant 0 : index
    %5 = vector.load %arg2[%c0, %c0_1] : memref<16x128xf32, #tpu.memory_space<vmem>>, vector<16x128xf32>
    %c0_2 = arith.constant 0 : index
    %c0_3 = arith.constant 0 : index
    %6 = vector.load %arg3[%c0_2, %c0_3] : memref<16x128xf32, #tpu.memory_space<vmem>>, vector<16x128xf32>
    %7 = math.log %5 : vector<16x128xf32>
    %cst = arith.constant -1.000000e+02 : f32
    %8 = vector.broadcast %cst : f32 to vector<16x128xf32>
    %9 = arith.maximumf %7, %8 : vector<16x128xf32>
    %cst_4 = arith.constant 1.000000e+00 : f32
    %10 = vector.broadcast %cst_4 : f32 to vector<16x128xf32>
    %11 = arith.subf %10, %5 : vector<16x128xf32>
    %12 = math.log %11 : vector<16x128xf32>
    %cst_5 = arith.constant -1.000000e+02 : f32
    %13 = vector.broadcast %cst_5 : f32 to vector<16x128xf32>
    %14 = arith.maximumf %12, %13 : vector<16x128xf32>
    %15 = arith.subf %9, %14 : vector<16x128xf32>
    %16 = arith.mulf %6, %15 : vector<16x128xf32>
    %17 = arith.addf %16, %14 : vector<16x128xf32>
    %cst_6 = arith.constant 0.000000e+00 : f32
    %18 = vector.broadcast %cst_6 : f32 to vector<16x128xf32>
    %19 = arith.subf %18, %17 : vector<16x128xf32>
    %cst_7 = arith.constant 5.000000e-01 : f32
    %20 = vector.broadcast %cst_7 : f32 to vector<16x128xf32>
    %21 = arith.cmpf ogt, %6, %20 : vector<16x128xf32>
    %22 = arith.extui %21 : vector<16x128xi1> to vector<16x128xi32>
    %23 = arith.sitofp %22 : vector<16x128xi32> to vector<16x128xf32>
    %cst_8 = arith.constant 5.000000e-01 : f32
    %24 = vector.broadcast %cst_8 : f32 to vector<16x128xf32>
    %25 = arith.cmpf olt, %6, %24 : vector<16x128xf32>
    %26 = arith.extui %25 : vector<16x128xi1> to vector<16x128xi32>
    %27 = arith.sitofp %26 : vector<16x128xi32> to vector<16x128xf32>
    %28 = arith.mulf %23, %19 : vector<16x128xf32>
    %29 = arith.mulf %27, %19 : vector<16x128xf32>
    %c1_i32_9 = arith.constant 1 : i32
    %30 = arith.addi %1, %c1_i32_9 : i32
    %c16_i32 = arith.constant 16 : i32
    %31 = arith.muli %30, %c16_i32 : i32
    %c16_i32_10 = arith.constant 16 : i32
    %32 = arith.cmpi sle, %31, %c16_i32_10 : i32
    %c16_i32_11 = arith.constant 16 : i32
    %33 = arith.muli %1, %c16_i32_11 : i32
    %c16_i32_12 = arith.constant 16 : i32
    %34 = arith.cmpi slt, %33, %c16_i32_12 : i32
    %35 = arith.extui %32 : i1 to i32
    %c0_i32_13 = arith.constant 0 : i32
    %36 = arith.cmpi ne, %35, %c0_i32_13 : i32
    scf.if %36 {
      %c0_15 = arith.constant 0 : index
      %c0_16 = arith.constant 0 : index
      %c0_17 = arith.constant 0 : index
      %41 = vector.load %arg4[%c0_15, %c0_16, %c0_17] : memref<1x8x128xf32, #tpu.memory_space<vmem>>, vector<1x8x128xf32>
      %42 = vector.shape_cast %41 : vector<1x8x128xf32> to vector<8x128xf32>
      %43 = vector.shape_cast %28 : vector<16x128xf32> to vector<2x8x128xf32>
      %cst_18 = arith.constant dense<0.000000e+00> : vector<8x128xf32>
      %44 = vector.multi_reduction <add>, %43, %cst_18 [0] : vector<2x8x128xf32> to vector<8x128xf32>
      %45 = arith.addf %42, %44 : vector<8x128xf32>
      %c0_19 = arith.constant 0 : index
      %c0_20 = arith.constant 0 : index
      %c0_21 = arith.constant 0 : index
      %46 = vector.load %arg4[%c0_19, %c0_20, %c0_21] : memref<1x8x128xf32, #tpu.memory_space<vmem>>, vector<1x8x128xf32>
      %47 = vector.shape_cast %46 : vector<1x8x128xf32> to vector<8x128xf32>
      %48 = vector.shape_cast %45 : vector<8x128xf32> to vector<1x8x128xf32>
      tpu.vector_store %arg4[%c0_19, %c0_20, %c0_21], %48 {strides = array<i32>} : memref<1x8x128xf32, #tpu.memory_space<vmem>>, vector<1x8x128xf32>,
      %c0_22 = arith.constant 0 : index
      %c0_23 = arith.constant 0 : index
      %c0_24 = arith.constant 0 : index
      %49 = vector.load %arg5[%c0_22, %c0_23, %c0_24] : memref<1x8x128xf32, #tpu.memory_space<vmem>>, vector<1x8x128xf32>
      %50 = vector.shape_cast %49 : vector<1x8x128xf32> to vector<8x128xf32>
      %51 = vector.shape_cast %29 : vector<16x128xf32> to vector<2x8x128xf32>
      %cst_25 = arith.constant dense<0.000000e+00> : vector<8x128xf32>
      %52 = vector.multi_reduction <add>, %51, %cst_25 [0] : vector<2x8x128xf32> to vector<8x128xf32>
      %53 = arith.addf %50, %52 : vector<8x128xf32>
      %c0_26 = arith.constant 0 : index
      %c0_27 = arith.constant 0 : index
      %c0_28 = arith.constant 0 : index
      %54 = vector.load %arg5[%c0_26, %c0_27, %c0_28] : memref<1x8x128xf32, #tpu.memory_space<vmem>>, vector<1x8x128xf32>
      %55 = vector.shape_cast %54 : vector<1x8x128xf32> to vector<8x128xf32>
      %56 = vector.shape_cast %53 : vector<8x128xf32> to vector<1x8x128xf32>
      tpu.vector_store %arg5[%c0_26, %c0_27, %c0_28], %56 {strides = array<i32>} : memref<1x8x128xf32, #tpu.memory_space<vmem>>, vector<1x8x128xf32>,
      %c0_29 = arith.constant 0 : index
      %c0_30 = arith.constant 0 : index
      %c0_31 = arith.constant 0 : index
      %57 = vector.load %arg6[%c0_29, %c0_30, %c0_31] : memref<1x8x128xf32, #tpu.memory_space<vmem>>, vector<1x8x128xf32>
      %58 = vector.shape_cast %57 : vector<1x8x128xf32> to vector<8x128xf32>
      %59 = vector.shape_cast %23 : vector<16x128xf32> to vector<2x8x128xf32>
      %cst_32 = arith.constant dense<0.000000e+00> : vector<8x128xf32>
      %60 = vector.multi_reduction <add>, %59, %cst_32 [0] : vector<2x8x128xf32> to vector<8x128xf32>
      %61 = arith.addf %58, %60 : vector<8x128xf32>
      %c0_33 = arith.constant 0 : index
      %c0_34 = arith.constant 0 : index
      %c0_35 = arith.constant 0 : index
      %62 = vector.load %arg6[%c0_33, %c0_34, %c0_35] : memref<1x8x128xf32, #tpu.memory_space<vmem>>, vector<1x8x128xf32>
      %63 = vector.shape_cast %62 : vector<1x8x128xf32> to vector<8x128xf32>
      %64 = vector.shape_cast %61 : vector<8x128xf32> to vector<1x8x128xf32>
      tpu.vector_store %arg6[%c0_33, %c0_34, %c0_35], %64 {strides = array<i32>} : memref<1x8x128xf32, #tpu.memory_space<vmem>>, vector<1x8x128xf32>,
    } else {
    }
    %true = arith.constant true
    %37 = arith.xori %32, %true : i1
    %38 = arith.andi %37, %34 : i1
    %39 = arith.extui %38 : i1 to i32
    %c0_i32_14 = arith.constant 0 : i32
    %40 = arith.cmpi ne, %39, %c0_i32_14 : i32
    scf.if %40 {
      %41 = tpu.iota {dimensions = array<i32: 0>} : vector<16x128xi32>
      %c16_i32_15 = arith.constant 16 : i32
      %42 = arith.muli %1, %c16_i32_15 : i32
      %43 = vector.broadcast %42 : i32 to vector<16x128xi32>
      %44 = arith.addi %43, %41 : vector<16x128xi32>
      %c16_i32_16 = arith.constant 16 : i32
      %45 = vector.broadcast %c16_i32_16 : i32 to vector<16x128xi32>
      %46 = arith.cmpi slt, %44, %45 : vector<16x128xi32>
      %cst_17 = arith.constant 0.000000e+00 : f32
      %47 = vector.broadcast %cst_17 : f32 to vector<16x128xf32>
      %48 = arith.select %46, %28, %47 : vector<16x128xi1>, vector<16x128xf32>
      %cst_18 = arith.constant 0.000000e+00 : f32
      %49 = vector.broadcast %cst_18 : f32 to vector<16x128xf32>
      %50 = arith.select %46, %29, %49 : vector<16x128xi1>, vector<16x128xf32>
      %cst_19 = arith.constant 0.000000e+00 : f32
      %51 = vector.broadcast %cst_19 : f32 to vector<16x128xf32>
      %52 = arith.select %46, %23, %51 : vector<16x128xi1>, vector<16x128xf32>
      %c0_20 = arith.constant 0 : index
      %c0_21 = arith.constant 0 : index
      %c0_22 = arith.constant 0 : index
      %53 = vector.load %arg4[%c0_20, %c0_21, %c0_22] : memref<1x8x128xf32, #tpu.memory_space<vmem>>, vector<1x8x128xf32>
      %54 = vector.shape_cast %53 : vector<1x8x128xf32> to vector<8x128xf32>
      %55 = vector.shape_cast %48 : vector<16x128xf32> to vector<2x8x128xf32>
      %cst_23 = arith.constant dense<0.000000e+00> : vector<8x128xf32>
      %56 = vector.multi_reduction <add>, %55, %cst_23 [0] : vector<2x8x128xf32> to vector<8x128xf32>
      %57 = arith.addf %54, %56 : vector<8x128xf32>
      %c0_24 = arith.constant 0 : index
      %c0_25 = arith.constant 0 : index
      %c0_26 = arith.constant 0 : index
      %58 = vector.load %arg4[%c0_24, %c0_25, %c0_26] : memref<1x8x128xf32, #tpu.memory_space<vmem>>, vector<1x8x128xf32>
      %59 = vector.shape_cast %58 : vector<1x8x128xf32> to vector<8x128xf32>
      %60 = vector.shape_cast %57 : vector<8x128xf32> to vector<1x8x128xf32>
      tpu.vector_store %arg4[%c0_24, %c0_25, %c0_26], %60 {strides = array<i32>} : memref<1x8x128xf32, #tpu.memory_space<vmem>>, vector<1x8x128xf32>,
      %c0_27 = arith.constant 0 : index
      %c0_28 = arith.constant 0 : index
      %c0_29 = arith.constant 0 : index
      %61 = vector.load %arg5[%c0_27, %c0_28, %c0_29] : memref<1x8x128xf32, #tpu.memory_space<vmem>>, vector<1x8x128xf32>
      %62 = vector.shape_cast %61 : vector<1x8x128xf32> to vector<8x128xf32>
      %63 = vector.shape_cast %50 : vector<16x128xf32> to vector<2x8x128xf32>
      %cst_30 = arith.constant dense<0.000000e+00> : vector<8x128xf32>
      %64 = vector.multi_reduction <add>, %63, %cst_30 [0] : vector<2x8x128xf32> to vector<8x128xf32>
      %65 = arith.addf %62, %64 : vector<8x128xf32>
      %c0_31 = arith.constant 0 : index
      %c0_32 = arith.constant 0 : index
      %c0_33 = arith.constant 0 : index
      %66 = vector.load %arg5[%c0_31, %c0_32, %c0_33] : memref<1x8x128xf32, #tpu.memory_space<vmem>>, vector<1x8x128xf32>
      %67 = vector.shape_cast %66 : vector<1x8x128xf32> to vector<8x128xf32>
      %68 = vector.shape_cast %65 : vector<8x128xf32> to vector<1x8x128xf32>
      tpu.vector_store %arg5[%c0_31, %c0_32, %c0_33], %68 {strides = array<i32>} : memref<1x8x128xf32, #tpu.memory_space<vmem>>, vector<1x8x128xf32>,
      %c0_34 = arith.constant 0 : index
      %c0_35 = arith.constant 0 : index
      %c0_36 = arith.constant 0 : index
      %69 = vector.load %arg6[%c0_34, %c0_35, %c0_36] : memref<1x8x128xf32, #tpu.memory_space<vmem>>, vector<1x8x128xf32>
      %70 = vector.shape_cast %69 : vector<1x8x128xf32> to vector<8x128xf32>
      %71 = vector.shape_cast %52 : vector<16x128xf32> to vector<2x8x128xf32>
      %cst_37 = arith.constant dense<0.000000e+00> : vector<8x128xf32>
      %72 = vector.multi_reduction <add>, %71, %cst_37 [0] : vector<2x8x128xf32> to vector<8x128xf32>
      %73 = arith.addf %70, %72 : vector<8x128xf32>
      %c0_38 = arith.constant 0 : index
      %c0_39 = arith.constant 0 : index
      %c0_40 = arith.constant 0 : index
      %74 = vector.load %arg6[%c0_38, %c0_39, %c0_40] : memref<1x8x128xf32, #tpu.memory_space<vmem>>, vector<1x8x128xf32>
      %75 = vector.shape_cast %74 : vector<1x8x128xf32> to vector<8x128xf32>
      %76 = vector.shape_cast %73 : vector<8x128xf32> to vector<1x8x128xf32>
      tpu.vector_store %arg6[%c0_38, %c0_39, %c0_40], %76 {strides = array<i32>} : memref<1x8x128xf32, #tpu.memory_space<vmem>>, vector<1x8x128xf32>,
    } else {
    }
    return
  }
  func.func @transform_0(%arg0: i32, %arg1: i32) -> (i32, i32) {
    %c1_i32 = arith.constant 1 : i32
    %0 = arith.muli %arg0, %c1_i32 : i32
    %1 = arith.addi %0, %arg1 : i32
    %c0_i32 = arith.constant 0 : i32
    %2 = arith.minsi %1, %c0_i32 : i32
    %c0_i32_0 = arith.constant 0 : i32
    %c0_i32_1 = arith.constant 0 : i32
    return %2, %c0_i32_0 : i32, i32
  }
  func.func @transform_1(%arg0: i32, %arg1: i32) -> (i32, i32) {
    %c1_i32 = arith.constant 1 : i32
    %0 = arith.muli %arg0, %c1_i32 : i32
    %1 = arith.addi %0, %arg1 : i32
    %c0_i32 = arith.constant 0 : i32
    %2 = arith.minsi %1, %c0_i32 : i32
    %c0_i32_0 = arith.constant 0 : i32
    %c0_i32_1 = arith.constant 0 : i32
    return %2, %c0_i32_0 : i32, i32
  }
  func.func @transform_2(%arg0: i32, %arg1: i32) -> (i32, i32, i32) {
    %c0_i32 = arith.constant 0 : i32
    %c0_i32_0 = arith.constant 0 : i32
    %c0_i32_1 = arith.constant 0 : i32
    return %arg0, %c0_i32, %c0_i32_0 : i32, i32, i32
  }
  func.func @transform_3(%arg0: i32, %arg1: i32) -> (i32, i32, i32) {
    %c0_i32 = arith.constant 0 : i32
    %c0_i32_0 = arith.constant 0 : i32
    %c0_i32_1 = arith.constant 0 : i32
    return %arg0, %c0_i32, %c0_i32_0 : i32, i32, i32
  }
  func.func @transform_4(%arg0: i32, %arg1: i32) -> (i32, i32, i32) {
    %c0_i32 = arith.constant 0 : i32
    %c0_i32_0 = arith.constant 0 : i32
    %c0_i32_1 = arith.constant 0 : i32
    return %arg0, %c0_i32, %c0_i32_0 : i32, i32, i32
  }
}

</mosaic_0001>

<bundles_post_ra>
// kernel: tpu_custom_call.1
= control target key start
LH: loop header
LB: loop body
LE: loop exit
PB: predicated region body
PF: predicated region fallthrough
CT: control target
= control target key end

     0   :  { %10 = vsyncpa [#allocation3], 0  ;;  %s1357_s0 = inlined_call_operand.hbm [shape: f32[16,128], index: 0, kind: input, shape index: {}]   ;;  %s1358_s1 = inlined_call_operand.hbm [shape: f32[16,128], index: 1, kind: input, shape index: {}]   ;;  %s1359_s2 = inlined_call_operand.hbm [shape: f32[2,8,128], index: 2, kind: output, shape index: {0}]   ;;  %s1360_s3 = inlined_call_operand.hbm [shape: f32[2,8,128], index: 3, kind: output, shape index: {1}]   ;;  %s1361_s4 = inlined_call_operand.hbm [shape: f32[2,8,128], index: 4, kind: output, shape index: {2}]  }
   0x1   :  { %12 = vsyncpa [#allocation3 + $0x1], 0 }
   0x2   :  { %13 = vsyncpa [#allocation6], 0 }
   0x3   :  { %15 = vsyncpa [#allocation6 + $0x1], 0 }
   0x4   :  { %16 = vsyncpa [#allocation4], 0 }
   0x5   :  { %18 = vsyncpa [#allocation4 + $0x1], 0 }
   0x6   :  { %19 = vsyncpa [#allocation9], 0 }
   0x7   :  { %21 = vsyncpa [#allocation9 + $0x1], 0  ;;  %s1034_s15 = smov 0   ;;  %s1036_s16 = smov 0  }
   0x8   :  { %s1038_s17 = smov 0   ;;  %s1040_s18 = smov 0  }
   0x9   :  { %s1042_s19 = smov 0   ;;  %s1044_s20 = smov 0  }
   0xa   :  { %s1046_s21 = smov 0   ;;  %s1048_s22 = smov 0  }
   0xb LB: > { %s1073_s23 = sadd.s32 4294967295, %s999_s22   ;;  %s1364_s24 = sadd.s32 4294967294, %s999_s22   ;;  %s999_s22 = sphi %s1048_s22, %s27_s22   ;;  %s995_s21 = sphi %s1046_s21, %s1386_s21   ;;  %s991_s20 = sphi %s1044_s20, %s1385_s20   ;;  %s987_s19 = sphi %s1042_s19, %s1347_s19   ;;  %s983_s18 = sphi %s1040_s18, %s1384_s18   ;;  %s979_s17 = sphi %s1038_s17, %s1383_s17   ;;  %s975_s16 = sphi %s1036_s16, %s1382_s16   ;;  %s971_s15 = sphi %s1034_s15, %s1381_s15  }
   0xc   : > { %s39_s25 = sadd.s32 1, %s995_s21  ;;  %p968_p1 = scmp.ne.s32.totalorder %s987_s19, 0 }
   0xd   : > { %p41_p0 = scmp.ge.s32.totalorder %s39_s25, 2  ;;  %p60_p2 = scmp.eq.s32.totalorder %s999_s22, 0 }
   0xe   : > { %p65_p3 = scmp.ne.s32.totalorder %s987_s19, %s983_s18  ;;  %p66_p5 = scmp.eq.s32.totalorder %s1073_s23, 0 }
   0xf   : > { %s1388_s25 = smov (%p41_p0, %s39_s25), 0  ;;  %p1082_p4 = por %p968_p1, %p60_p2 }
  0x10   : > { %1366 = sst [smem:[#allocation15_spill]] %s1388_s25  ;;  %p1087_p6 = por %p66_p5, %p65_p3 }
  0x11   : > { %s107_s28 = ssub.s32 %s995_s21, %s1388_s25  ;;  %s110_s29 = sadd.s32 1, %s979_s17 }
  0x12   : > { %s1368_s27 = scalar_select %p1087_p6, 1, 0 }
  0x13   : > { %p108_p7 = scmp.eq.s32.totalorder %s107_s28, 0  ;;  %p120_p8 = scmp.ne.s32.totalorder %s979_s17, %s975_s16 }
  0x14   : > { %p121_p9 = scmp.eq.s32.totalorder %s1073_s23, 1  ;;  %p126_p10 = scmp.ne.s32.totalorder %s975_s16, %s971_s15 }
  0x15   : > { %s1095_s30 = scalar_select %p108_p7, %s979_s17, %s110_s29  }
  0x16   : > { %p127_p11 = scmp.eq.s32.totalorder %s1364_s24, 1  ;;  %p1104_p12 = por %p121_p9, %p120_p8 }
  0x17   : > { %p687_p1 = scmp.lt.s32.totalorder %s999_s22, 2  ;;  %s1001_s7 = smov [#allocation2]  }
  0x18   : > { %s1369_s5 = scalar_select %p1104_p12, 1, 0 }
  0x19   : > { %p1109_p0 = por %p127_p11, %p126_p10  ;;  %s213_s8 = sshll.u32 %s1001_s7, 4  ;;  %s214_s8 = int_to_ptr.vmem [resolvable:$true] %s213_s8 }
  0x1a   : > { %p1116_p2 = pnand %p687_p1, %p1082_p4  ;;  %s772_s12 = scalar_lea.hbm %s1357_s0, 256 }
  0x1b   : > { %s1370_s6 = scalar_select %p1109_p0, 1, 0 }
  0x1c   : > { %p773_p3 = scmp.ne.s32.totalorder %s1357_s0, %s772_s12  ;;  %p774_p5 = pneg %p1116_p2 }
  0x1d   : > { %p779_p8 = scmp.lt.u32.totalorder %s772_s12, %s772_s12  ;;  %p781_p9 = scmp.lt.u32.totalorder %s772_s12, %s1357_s0 }
  0x1e   : > { %p775_p7 = pnand %p774_p5, %p773_p3 }
  0x1f   : > { %p782_p10 = por %p781_p9, %p779_p8 }
  0x20   : > { %p776_p4 = pneg %p775_p7 }
  0x22   : > { %p783_p11 = pnand %p782_p10, %p776_p4 }
  0x24   : > { %786 = shalt.err (!%p783_p11)
}
  0x25   : > { %s787_s28 = scalar_lea.vmem %s214_s8, 256  ;;  %s794_s29 = scalar_lea.vmem %s214_s8, 512 }
  0x26   : > { %p788_p1 = scmp.ne.s32.totalorder %s214_s8, %s787_s28  ;;  %p795_p12 = scmp.lt.s32.totalorder %s214_s8, %s214_s8 }
  0x27   : > { %p796_p6 = scmp.lt.s32.totalorder %s794_s29, %s787_s28 }
  0x28   : > { %p790_p13 = pnand %p788_p1, %p774_p5 }
  0x29   : > { %p797_p3 = por %p796_p6, %p795_p12 }
  0x2a   : > { %p791_p0 = pneg %p790_p13 }
  0x2c   : > { %p798_p7 = pnand %p797_p3, %p791_p0 }
  0x2e   : > { %801 = shalt.err (!%p798_p7)
}
  0x2f   : > { %s1002_s7 = smov 128   ;;  %s1003_s10 = smov 8  }
  0x30   : > { %673 = dma.hbm_to_vmem [thread:$0]  (!%p1116_p2), %s1357_s0, 256, %s214_s8, [#allocation3], %s1002_s7, %s1002_s7, %s1003_s10  }
  0x31   : > { %p635_p13 = scmp.ge.s32.totalorder %s999_s22, 1  ;;  %p245_p4 = scmp.lt.s32.totalorder %s999_s22, 3 }
  0x32   : > { %s1004_s14 = smov [#allocation5]   ;;  %s802_s29 = scalar_lea.hbm %s1358_s1, 256 }
  0x33   : > { %p1147_p8 = pnand %p635_p13, %p245_p4  ;;  %s237_s18 = sshll.u32 %s1004_s14, 4  ;;  %s238_s18 = int_to_ptr.vmem [resolvable:$true] %s237_s18 }
  0x34   : > { %p803_p6 = scmp.ne.s32.totalorder %s1358_s1, %s802_s29  ;;  %p809_p9 = scmp.lt.u32.totalorder %s802_s29, %s802_s29 }
  0x35   : > { %s1372_s13 = scalar_select %p1147_p8, 1, 0 }
  0x36   : > { %p805_p12 = pnand %p803_p6, %p774_p5  ;;  %p811_p10 = scmp.lt.u32.totalorder %s802_s29, %s1358_s1 }
  0x38   : > { %p806_p0 = pneg %p805_p12  ;;  %p812_p11 = por %p811_p10, %p809_p9 }
  0x3a   : > { %p813_p1 = pnand %p812_p11, %p806_p0 }
  0x3c   : > { %816 = shalt.err (!%p813_p1)
}
  0x3d   : > { %s817_s12 = scalar_lea.vmem %s238_s18, 256  ;;  %s824_s24 = scalar_lea.vmem %s238_s18, 512 }
  0x3e   : > { %p818_p3 = scmp.ne.s32.totalorder %s238_s18, %s817_s12  ;;  %p825_p4 = scmp.lt.s32.totalorder %s238_s18, %s238_s18 }
  0x3f   : > { %p826_p8 = scmp.lt.s32.totalorder %s824_s24, %s817_s12 }
  0x40   : > { %p820_p7 = pnand %p818_p3, %p774_p5 }
  0x41   : > { %p827_p6 = por %p826_p8, %p825_p4 }
  0x42   : > { %p821_p13 = pneg %p820_p7 }
  0x44   : > { %p828_p12 = pnand %p827_p6, %p821_p13 }
  0x46   : > { %831 = shalt.err (!%p828_p12)
}
  0x47   : > { %676 = dma.hbm_to_vmem [thread:$0]  (!%p1116_p2), %s1358_s1, 256, %s238_s18, [#allocation6], %s1002_s7, %s1002_s7, %s1003_s10  }
  0x48   : > { %p1373_p0 = scmp.ne.s32.totalorder %s1372_s13, 0 }
  0x49   : > { %s251_s26 = sand.u32 (!%p1373_p0), 1, %s987_s19   ;;  %p1374_p5 = scmp.ne.s32.totalorder (!%p1373_p0), %s1368_s27, 0 }
  0x4a   : > { %249 = sbr.rel (%p1373_p0) target bundleno = 207 (0xcf), region = 28  ;;  %s636_s28 = sshll.u32 (!%p1373_p0), %s251_s26, 4 }
  0x4b   : > { %s252_s29 = scalar_lea.sflag (!%p1373_p0), [#allocation3], %s251_s26  ;;  %s255_s8 = scalar_lea.vmem (!%p1373_p0), [#allocation2], %s636_s28 }
  0x51   : > { %953 = dma.done.wait (%p1374_p5), %s252_s29, 256  }
  0x52   : > { %955 = vsyncadd (%p1374_p5), %s252_s29, 4294967040  ;;  %s261_s9 = scalar_lea.sflag [#allocation6], %s251_s26  ;;  %s1181_s11 = scalar_lea.vmem [#allocation5], %s636_s28 }
  0x53   : > { %957 = dma.done.wait (%p1374_p5), %s261_s9, 256  }
  0x54   : > { %959 = vsyncadd (%p1374_p5), %s261_s9, 4294967040  ;;  %s287_s7 = sand.u32 1, %s975_s16   ;;  %s1189_s10 = sshll.u32 %s991_s20, 4  ;;  %v1005_v0 = vmov 0.0   ;;  %v320_v1 = vld [vmem:[%s255_s8] sm:$0xff]  ;;  %v321_v2 = vld [vmem:[%s255_s8 + $0x8] sm:$0xff] }
  0x55   : > { %s638_s13 = sshll.u32 %s287_s7, 3  ;;  %s659_s18 = sadd.s32 16, %s1189_s10  ;;  %764 = vlog2.f32 %v320_v1  ;;  %v330_v3 = vsub.f32 1.0, %v320_v1  ;;  %v331_v4 = vsub.f32 1.0, %v321_v2  ;;  %v322_v16 = vld [vmem:[%s1181_s11] sm:$0xff]  ;;  %v323_v18 = vld [vmem:[%s1181_s11 + $0x8] sm:$0xff] }
  0x56   : > { %s1194_s12 = scalar_lea.vmem [#allocation7], %s638_s13  ;;  %s1197_s24 = scalar_lea.vmem [#allocation8], %s638_s13  ;;  %766 = vlog2.f32 %v321_v2  ;;  %vm346_vm0 = vcmp.gt.f32.partialorder %v322_v16, 0.5  ;;  %vm352_vm1 = vcmp.lt.f32.partialorder %v322_v16, 0.5  ;;  %vm347_vm2 = vcmp.gt.f32.partialorder %v323_v18, 0.5 }
  0x57   : > { %317 = vst [vmem:[%s1194_s12] sm:$0xff] %v1005_v0  ;;  %318 = vst [vmem:[%s1197_s24] sm:$0xff] %v1005_v0  ;;  %p366_p2 = scmp.lt.s32.totalorder %s1189_s10, 16  ;;  %s1201_s27 = scalar_lea.vmem [#allocation10], %s638_s13  ;;  %768 = vlog2.f32 %v330_v3  ;;  %vm353_vm3 = vcmp.lt.f32.partialorder %v323_v18, 0.5  ;;  %v641_v25 = vsel %vm346_vm0, 1.0, %v1005_v0  ;;  %v643_v26 = vsel %vm352_vm1, 1.0, %v1005_v0 }
  0x58   : > { %319 = vst [vmem:[%s1201_s27] sm:$0xff] %v1005_v0  ;;  %770 = vlog2.f32 %v331_v4  ;;  %v642_v28 = vsel %vm347_vm2, 1.0, %v1005_v0  ;;  %v644_v29 = vsel %vm353_vm3, 1.0, %v1005_v0  ;;  %p1208_p8 = scmp.gt.s32.totalorder %s659_s18, 16 }
  0x59   : > { %v379_v40 = vadd.f32 (!%p1208_p8), %v642_v28, %v641_v25 }
  0x5e   : > { %v370_v35 = vld [vmem:[%s1194_s12] sm:$0xff] (!%p1208_p8)  ;;  %v374_v37 = vld [vmem:[%s1197_s24] sm:$0xff] (!%p1208_p8) }
  0x5f   : > { %v765_v5 = vpop.eup %764  ;;  %v378_v39 = vld [vmem:[%s1201_s27] sm:$0xff] (!%p1208_p8) }
  0x60   : > { %v767_v6 = vpop.eup %766  ;;  %v325_v7 = vmul.f32 0.6931472, %v765_v5  ;;  %v380_v43 = vadd.f32 (!%p1208_p8), %v379_v40, %v378_v39 }
  0x61   : > { %v769_v8 = vpop.eup %768  ;;  %v327_v9 = vmul.f32 0.6931472, %v767_v6 }
  0x62   : > { %v771_v10 = vpop.eup %770  ;;  %v328_v11 = vmax.f32 %v325_v7, -100.0  ;;  %v333_v12 = vmul.f32 0.6931472, %v769_v8  ;;  %381 = vst [vmem:[%s1201_s27] sm:$0xff] (!%p1208_p8), %v380_v43 }
  0x63   : > { %v329_v13 = vmax.f32 %v327_v9, -100.0  ;;  %v335_v14 = vmul.f32 0.6931472, %v771_v10 }
  0x64   : > { %v336_v15 = vmax.f32 %v333_v12, -100.0 }
  0x65   : > { %v337_v17 = vmax.f32 %v335_v14, -100.0 }
  0x66   : > { %v338_v19 = vsub.f32 %v328_v11, %v336_v15 }
  0x67   : > { %v339_v20 = vsub.f32 %v329_v13, %v337_v17 }
  0x68   : > { %v340_v21 = vmul.f32 %v338_v19, %v322_v16 }
  0x69   : > { %v341_v22 = vmul.f32 %v339_v20, %v323_v18  ;;  %369 = sbr.rel (%p1208_p8) target bundleno = 118 (0x76), region = 44 }
  0x6a   : > { %v342_v23 = vadd.f32 %v340_v21, %v336_v15 }
  0x6b   : > { %v343_v24 = vadd.f32 %v341_v22, %v337_v17 }
  0x6c   : > { %v344_v27 = vsub.f32 0.0, %v342_v23 }
  0x6d   : > { %v345_v30 = vsub.f32 0.0, %v343_v24 }
  0x6e   : > { %v358_v31 = vmul.f32 %v641_v25, %v344_v27  ;;  %v360_v32 = vmul.f32 %v643_v26, %v344_v27 }
  0x6f   : > { %v359_v33 = vmul.f32 %v642_v28, %v345_v30  ;;  %v361_v34 = vmul.f32 %v644_v29, %v345_v30 }
  0x71   : > { %v371_v36 = vadd.f32 %v359_v33, %v358_v31  ;;  %v375_v38 = vadd.f32 %v361_v34, %v360_v32 }
  0x73   : > { %v372_v41 = vadd.f32 %v371_v36, %v370_v35  ;;  %v376_v42 = vadd.f32 %v375_v38, %v374_v37 }
  0x75   : > { %373 = vst [vmem:[%s1194_s12] sm:$0xff] %v372_v41  ;;  %377 = vst [vmem:[%s1197_s24] sm:$0xff] %v376_v42 }
  0x76 PF: > { %p383_p9 = pnand %p1208_p8, %p366_p2 }
  0x77   : > { %v387_v44 = vlaneseq (!%p383_p9)  ;;  %v390_v45 = vstv (!%p383_p9), %s1189_s10  ;;  %v409_v58 = vld [vmem:[%s1201_s27] sm:$0xff] (!%p383_p9) }
  0x78   : > { %386 = sbr.rel (%p383_p9) target bundleno = 135 (0x87), region = 48 }
  0x79   : > { %v388_v46 = vshrl.u32 (!%p383_p9), %v387_v44, 7 }
  0x7b   : > { %v389_v47 = vadd.s32 (!%p383_p9), 8, %v388_v46  ;;  %v391_v48 = vadd.s32 (!%p383_p9), %v390_v45, %v388_v46 }
  0x7c   : > { %v401_v54 = vld [vmem:[%s1194_s12] sm:$0xff] (!%p383_p9)  ;;  %v405_v56 = vld [vmem:[%s1197_s24] sm:$0xff] (!%p383_p9) }
  0x7d   : > { %v392_v49 = vadd.s32 (!%p383_p9), %v390_v45, %v389_v47  ;;  %vm393_vm4 = vcmp.lt.s32.totalorder (!%p383_p9), %v391_v48, 16 }
  0x7e   : > { %v395_v50 = vsel (!%p383_p9), %vm393_vm4, %v358_v31, 0.0  ;;  %v397_v51 = vsel (!%p383_p9), %vm393_vm4, %v360_v32, 0.0  ;;  %v399_v52 = vsel (!%p383_p9), %vm393_vm4, %v641_v25, 0.0 }
  0x7f   : > { %vm394_vm5 = vcmp.lt.s32.totalorder %v392_v49, 16 }
  0x80   : > { %v396_v53 = vsel %vm394_vm5, %v359_v33, 0.0  ;;  %v398_v55 = vsel %vm394_vm5, %v361_v34, 0.0  ;;  %v400_v57 = vsel %vm394_vm5, %v642_v28, 0.0 }
  0x81   : > { %v402_v59 = vadd.f32 %v396_v53, %v395_v50  ;;  %v406_v60 = vadd.f32 %v398_v55, %v397_v51  ;;  %v410_v61 = vadd.f32 %v400_v57, %v399_v52 }
  0x83   : > { %v403_v62 = vadd.f32 %v402_v59, %v401_v54  ;;  %v407_v63 = vadd.f32 %v406_v60, %v405_v56  ;;  %v411_v0 = vadd.f32 %v410_v61, %v409_v58 }
  0x85   : > { %404 = vst [vmem:[%s1194_s12] sm:$0xff] %v403_v62  ;;  %408 = vst [vmem:[%s1197_s24] sm:$0xff] %v407_v63 }
  0x86   : > { %412 = vst [vmem:[%s1201_s27] sm:$0xff] %v411_v0 }
  0x87 PF: > { %s418_s14 = sand.u32 1, %s1073_s23   ;;  %s1233_s26 = sshll.u32 %s991_s20, 7 }
  0x88   : > { %s1239_s8 = scalar_lea.hbm %s1360_s3, %s1233_s26  ;;  %s450_s9 = sshll.u32 %s1197_s24, 4  ;;  %s1242_s9 = int_to_ptr.vmem [resolvable:$true] %s450_s9 }
  0x89   : > { %s1248_s13 = scalar_lea.hbm %s1359_s2, %s1233_s26  ;;  %s1250_s20 = scalar_lea.sflag [#allocation9], %s418_s14 }
  0x8a   : > { %s832_s23 = scalar_lea.vmem %s1242_s9, 128  ;;  %p1376_p11 = scmp.ne.s32.totalorder %s1369_s5, 0 }
  0x8b   : > { %p833_p10 = scmp.ne.s32.totalorder %s1242_s9, %s832_s23  ;;  %s1006_s18 = smov [#allocation8]  }
  0x8c   : > { %s836_s25 = sshll.u32 %s1006_s18, 4  ;;  %s837_s25 = int_to_ptr.vmem [resolvable:$false] %s836_s25 }
  0x8d   : > { %p834_p1 = pnand %p833_p10, %p1376_p11  ;;  %s838_s24 = scalar_lea.vmem %s837_s25, 256 }
  0x8e   : > { %p839_p7 = scmp.lt.s32.totalorder %s1242_s9, %s837_s25  ;;  %p840_p13 = scmp.lt.s32.totalorder %s838_s24, %s832_s23 }
  0x8f   : > { %p835_p3 = pneg %p834_p1 }
  0x90   : > { %p841_p4 = por %p840_p13, %p839_p7 }
  0x92   : > { %p842_p6 = pnand %p841_p4, %p835_p3 }
  0x94   : > { %845 = shalt.err (!%p842_p6)
}
  0x95   : > { %s846_s14 = scalar_lea.hbm %s1239_s8, 128  ;;  %s850_s11 = scalar_lea.hbm %s1360_s3, 256 }
  0x96   : > { %p847_p12 = scmp.ne.s32.totalorder %s1239_s8, %s846_s14  ;;  %p851_p2 = scmp.lt.u32.totalorder %s1239_s8, %s1360_s3 }
  0x97   : > { %p852_p8 = scmp.lt.u32.totalorder %s850_s11, %s846_s14  ;;  %p854_p10 = scmp.lt.u32.totalorder %s846_s14, %s1239_s8 }
  0x98   : > { %p848_p0 = pnand %p847_p12, %p1376_p11 }
  0x99   : > { %p853_p9 = por %p852_p8, %p851_p2 }
  0x9a   : > { %p849_p5 = pneg %p848_p0 }
  0x9b   : > { %p855_p1 = por %p854_p10, %p853_p9 }
  0x9d   : > { %p856_p3 = pnand %p855_p1, %p849_p5 }
  0x9f   : > { %859 = shalt.err (!%p856_p3)
}
  0xa0   : > { %665 = dma.vmem_to_hbm [thread:$0]  (%p1376_p11), %s1242_s9, 128, %s1239_s8, %s1250_s20  }
  0xa1   : > { %s437_s23 = sshll.u32 %s1194_s12, 4  ;;  %s1279_s28 = scalar_lea.hbm %s1361_s4, %s1233_s26  ;;  %s1281_s23 = int_to_ptr.vmem [resolvable:$true] %s437_s23 }
  0xa2   : > { %s463_s14 = sshll.u32 %s1201_s27, 4  ;;  %s414_s29 = scalar_lea.sflag [#allocation4], %s287_s7  ;;  %s464_s14 = int_to_ptr.vmem [resolvable:$true] %s463_s14 }
  0xa3   : > { %s860_s11 = scalar_lea.vmem %s1281_s23, 128  ;;  %s1007_s8 = smov [#allocation7]  }
  0xa4   : > { %p861_p7 = scmp.ne.s32.totalorder %s1281_s23, %s860_s11  ;;  %s864_s12 = sshll.u32 %s1007_s8, 4  ;;  %s865_s12 = int_to_ptr.vmem [resolvable:$false] %s864_s12 }
  0xa5   : > { %s866_s9 = scalar_lea.vmem %s865_s12, 256  ;;  %p867_p6 = scmp.lt.s32.totalorder %s1281_s23, %s865_s12 }
  0xa6   : > { %p862_p13 = pnand %p861_p7, %p1376_p11  ;;  %p868_p12 = scmp.lt.s32.totalorder %s866_s9, %s860_s11 }
  0xa8   : > { %p863_p4 = pneg %p862_p13  ;;  %p869_p0 = por %p868_p12, %p867_p6 }
  0xaa   : > { %p870_p5 = pnand %p869_p0, %p863_p4 }
  0xac   : > { %873 = shalt.err (!%p870_p5)
}
  0xad   : > { %s874_s7 = scalar_lea.hbm %s1248_s13, 128  ;;  %s878_s18 = scalar_lea.hbm %s1359_s2, 256 }
  0xae   : > { %p875_p2 = scmp.ne.s32.totalorder %s1248_s13, %s874_s7  ;;  %p879_p10 = scmp.lt.u32.totalorder %s1248_s13, %s1359_s2 }
  0xaf   : > { %p880_p1 = scmp.lt.u32.totalorder %s878_s18, %s874_s7  ;;  %p882_p7 = scmp.lt.u32.totalorder %s874_s7, %s1248_s13 }
  0xb0   : > { %p876_p8 = pnand %p875_p2, %p1376_p11 }
  0xb1   : > { %p881_p3 = por %p880_p1, %p879_p10 }
  0xb2   : > { %p877_p9 = pneg %p876_p8 }
  0xb3   : > { %p883_p13 = por %p882_p7, %p881_p3 }
  0xb5   : > { %p884_p4 = pnand %p883_p13, %p877_p9 }
  0xb7   : > { %887 = shalt.err (!%p884_p4)
}
  0xb8   : > { %664 = dma.vmem_to_hbm [thread:$0]  (%p1376_p11), %s1281_s23, 128, %s1248_s13, %s414_s29  }
  0xb9   : > { %s888_s11 = scalar_lea.vmem %s464_s14, 128  ;;  %s1008_s8 = smov [#allocation10]  }
  0xba   : > { %p889_p6 = scmp.ne.s32.totalorder %s464_s14, %s888_s11  ;;  %s892_s12 = sshll.u32 %s1008_s8, 4  ;;  %s893_s12 = int_to_ptr.vmem [resolvable:$false] %s892_s12 }
  0xbb   : > { %s894_s9 = scalar_lea.vmem %s893_s12, 256  ;;  %p895_p5 = scmp.lt.s32.totalorder %s464_s14, %s893_s12 }
  0xbc   : > { %p890_p12 = pnand %p889_p6, %p1376_p11  ;;  %p896_p2 = scmp.lt.s32.totalorder %s894_s9, %s888_s11 }
  0xbe   : > { %p891_p0 = pneg %p890_p12  ;;  %p897_p8 = por %p896_p2, %p895_p5 }
  0xc0   : > { %p898_p9 = pnand %p897_p8, %p891_p0 }
  0xc2   : > { %901 = shalt.err (!%p898_p9)
}
  0xc3   : > { %s902_s27 = scalar_lea.hbm %s1279_s28, 128  ;;  %s906_s29 = scalar_lea.hbm %s1361_s4, 256 }
  0xc4   : > { %p903_p10 = scmp.ne.s32.totalorder %s1279_s28, %s902_s27  ;;  %p907_p7 = scmp.lt.u32.totalorder %s1279_s28, %s1361_s4 }
  0xc5   : > { %p908_p13 = scmp.lt.u32.totalorder %s906_s29, %s902_s27  ;;  %p910_p6 = scmp.lt.u32.totalorder %s902_s27, %s1279_s28 }
  0xc6   : > { %p904_p1 = pnand %p903_p10, %p1376_p11 }
  0xc7   : > { %p909_p4 = por %p908_p13, %p907_p7 }
  0xc8   : > { %p905_p3 = pneg %p904_p1 }
  0xc9   : > { %p911_p12 = por %p910_p6, %p909_p4 }
  0xcb   : > { %p912_p0 = pnand %p911_p12, %p905_p3 }
  0xcd   : > { %915 = shalt.err (!%p912_p0)
}
  0xce   : > { %666 = dma.vmem_to_hbm [thread:$0]  (%p1376_p11), %s464_s14, 128, %s1279_s28, %s1250_s20  }
  0xcf PF: > { %s475_s10 = sand.u32 1, %s971_s15   ;;  %p1377_p5 = scmp.ne.s32.totalorder %s1370_s6, 0 }
  0xd0   : > { %p1378_p2 = scmp.ge.s32.totalorder %s999_s22, 2  ;;  %s476_s18 = scalar_lea.sflag [#allocation4], %s475_s10 }
  0xd2   : > { %p678_p8 = pnand %p1378_p2, %p1377_p5 }
  0xd4   : > { %961 = dma.done.wait (!%p678_p8), %s476_s18, 128  }
  0xd5   : > { %963 = vsyncadd (!%p678_p8), %s476_s18, 4294967168  ;;  %s1379_s25 = sadd.s32 4294967294, %s999_s22  }
  0xd6   : > { %s484_s24 = sand.u32 1, %s1379_s25  }
  0xd7   : > { %s485_s11 = scalar_lea.sflag [#allocation9], %s484_s24 }
  0xd8   : > { %965 = dma.done.wait (!%p678_p8), %s485_s11, 256  }
  0xd9   : > { %967 = vsyncadd (!%p678_p8), %s485_s11, 4294967040  ;;  %s27_s22 = sadd.s32 1, %s999_s22   ;;  %s1380_s5 = sld [smem:[#allocation15_spill]] }
  0xda   : > { %p24_p11 = scmp.ge.s32.totalorder %s27_s22, 4   ;;  %s1381_s15 = smov %s975_s16 }
  0xdb   : > { %s1382_s16 = smov %s979_s17  ;;  %s1383_s17 = smov %s1095_s30 }
  0xdc   : > { %s1384_s18 = smov %s987_s19  ;;  %s1347_s19 = smov 0  }
  0xdd   : > { %s1385_s20 = smov %s995_s21  ;;  %26 = sbr.rel (!%p24_p11) target bundleno = 11 (0xb), region = 130 }
  0xdf   : > { %s1386_s21 = smov %s1380_s5 }
  0xe4   :  { %499 = vsyncpa [#allocation3], 1 }
  0xe5   :  { %501 = vsyncpa [#allocation3 + $0x1], 1 }
  0xe6   :  { %502 = vsyncpa [#allocation6], 1 }
  0xe7   :  { %504 = vsyncpa [#allocation6 + $0x1], 1 }
  0xe8   :  { %505 = vsyncpa [#allocation4], 1 }
  0xe9   :  { %507 = vsyncpa [#allocation4 + $0x1], 1 }
  0xea   :  { %508 = vsyncpa [#allocation9], 1 }
  0xeb   :  { %510 = vsyncpa [#allocation9 + $0x1], 1 }

</bundles_post_ra>
